<compile_context>
chip_gen: v7x
topology: tpu7x:2x2x1
jax: 0.10.0
libtpu: 0.0.40
codegen_flags: <defaults>
</compile_context>

<pallas_src>
import functools

import jax
import jax.numpy as jnp
from jax.experimental import pallas as pl
from jax.experimental.pallas import tpu as pltpu

BN_EPS = 1e-5
LANE = 128                      # all channel dims padded to a multiple of the lane width
MATMUL_TILE_M = 512             # rows per grid step for the im2col matmuls (v7x-safe)
VMEM_LIMIT = 32 * 1024 * 1024   # explicit scoped-VMEM limit, safe on v5e/v6e/v7x


def make_divisible(v, divisor, min_value=None):
    if min_value is None:
        min_value = divisor
    new_v = max(min_value, int(v + divisor / 2) // divisor * divisor)
    if new_v < 0.9 * v:
        new_v += divisor
    return new_v


def _round_up(v, m):
    return (v + m - 1) // m * m


def _pad_dim(a, axis, target):
    pad = target - a.shape[axis]
    if pad <= 0:
        return a
    widths = [(0, 0)] * a.ndim
    widths[axis] = (0, pad)
    return jnp.pad(a, widths)


def _vmem():
    return pl.BlockSpec(memory_space=pltpu.MemorySpace.VMEM)


# ----------------------------- Pallas kernels -----------------------------

def _matmul_bn_act_kernel(x_ref, w_ref, s_ref, b_ref, o_ref, *, apply_relu):
    # x: (TM, K) bf16, w: (K, N) bf16, s/b: (1, N) f32 -> o: (TM, N) f32
    y = jnp.dot(x_ref[...], w_ref[...], preferred_element_type=jnp.float32)
    y = y * s_ref[...] + b_ref[...]
    if apply_relu:
        y = jnp.maximum(y, 0.0)
    o_ref[...] = y


def matmul_bn_act(x, w, scale, bias, apply_relu):
    # x: (M, K) bf16, w: (K, N) bf16, scale/bias: (1, N) f32 -> (M, N) f32
    M, K = x.shape
    N = w.shape[1]
    tm = M if M <= MATMUL_TILE_M else MATMUL_TILE_M     # full array when small, else 8-aligned tile
    grid = (pl.cdiv(M, tm),)
    return pl.pallas_call(
        functools.partial(_matmul_bn_act_kernel, apply_relu=apply_relu),
        out_shape=jax.ShapeDtypeStruct((M, N), jnp.float32),
        grid_spec=pltpu.PrefetchScalarGridSpec(
            num_scalar_prefetch=0,
            grid=grid,
            in_specs=[
                pl.BlockSpec((tm, K), lambda i: (i, 0)),     # M-tiled activations (pipelined)
                pl.BlockSpec((K, N), lambda i: (0, 0)),      # weights resident
                pl.BlockSpec((1, N), lambda i: (0, 0)),
                pl.BlockSpec((1, N), lambda i: (0, 0)),
            ],
            out_specs=pl.BlockSpec((tm, N), lambda i: (i, 0)),
        ),
        compiler_params=pltpu.CompilerParams(
            dimension_semantics=("parallel",),
            vmem_limit_bytes=VMEM_LIMIT),
    )(x, w, scale, bias)


def _block_kernel(x_ref, ew_ref, es_ref, eb_ref, dw_ref, dws_ref, dwb_ref,
                  pw_ref, ps_ref, pb_ref, o_ref, exp_pad, dw_flat,
                  *, H, W, use_shortcut):
    # x_ref / o_ref: (1, H*W, C) f32, spatial flattened row-major (h*W + w).
    # ew/pw: bf16 1x1-conv weights.  dw: (9, Cexp) f32 depthwise taps.
    # exp_pad: (H+2, W+2, Cexp) f32 VMEM scratch (zero halo -> no HBM pad copy).
    # dw_flat: (H*W, Cexp) f32 VMEM scratch.
    Cexp = ew_ref.shape[1]
    x = x_ref[0]                                                    # (HW, Cin) f32

    # ---- 1x1 expand + BN + ReLU (MXU: bf16 operands, f32 accumulate/epilogue) ----
    xe = jnp.dot(x.astype(jnp.bfloat16), ew_ref[...],
                 preferred_element_type=jnp.float32)
    xe = jnp.maximum(xe * es_ref[...] + eb_ref[...], 0.0)           # (HW, Cexp)

    # ---- scatter rows into the zero-padded spatial scratch (halo stays in VMEM) ----
    exp_pad[...] = jnp.zeros_like(exp_pad)
    for h in range(H):
        exp_pad[1 + h, pl.ds(1, W), :] = xe[h * W:(h + 1) * W, :]

    # ---- 3x3 depthwise + BN + ReLU (VPU, kept in f32 for v5e) ----
    xp = exp_pad[...]                                               # (H+2, W+2, Cexp)
    acc = jnp.zeros((H, W, Cexp), jnp.float32)
    for dy in range(3):
        for dx in range(3):
            tap = dw_ref[dy * 3 + dx, :][None, None, :]
            acc = acc + xp[dy:dy + H, dx:dx + W, :] * tap
    y = jnp.maximum(acc * dws_ref[0, :][None, None, :]
                    + dwb_ref[0, :][None, None, :], 0.0)
    for h in range(H):
        dw_flat[pl.ds(h * W, W), :] = y[h]

    # ---- 1x1 project + BN (+ fused residual) + ReLU ----
    z = jnp.dot(dw_flat[...].astype(jnp.bfloat16), pw_ref[...],
                preferred_element_type=jnp.float32)
    z = z * ps_ref[...] + pb_ref[...]
    if use_shortcut:
        z = z + x                                                   # identity shortcut, fused
    o_ref[0] = jnp.maximum(z, 0.0)


def block_forward(x, blk, H, W):
    # x: (B, H*W, Cin) f32, all channel dims already padded to LANE multiples.
    # TODO(synk): for large feature maps, grid additionally over spatial row-tiles
    # (with a 1-row halo); the demo feature map (4x4) fits a single tile per image.
    B, HW, Cin = x.shape
    Cexp = blk['exp_w'].shape[1]
    Cout = blk['proj_w'].shape[1]
    kernel = functools.partial(_block_kernel, H=H, W=W,
                               use_shortcut=blk['use_shortcut'])
    full2d = lambda b: (0, 0)
    return pl.pallas_call(
        kernel,
        out_shape=jax.ShapeDtypeStruct((B, HW, Cout), jnp.float32),
        grid_spec=pltpu.PrefetchScalarGridSpec(
            num_scalar_prefetch=0,
            grid=(B,),                                   # batch-parallel (megacore on v7x)
            in_specs=[
                pl.BlockSpec((1, HW, Cin), lambda b: (b, 0, 0)),
                pl.BlockSpec((Cin, Cexp), full2d),
                pl.BlockSpec((1, Cexp), full2d),
                pl.BlockSpec((1, Cexp), full2d),
                pl.BlockSpec((9, Cexp), full2d),
                pl.BlockSpec((1, Cexp), full2d),
                pl.BlockSpec((1, Cexp), full2d),
                pl.BlockSpec((Cexp, Cout), full2d),
                pl.BlockSpec((1, Cout), full2d),
                pl.BlockSpec((1, Cout), full2d),
            ],
            out_specs=pl.BlockSpec((1, HW, Cout), lambda b: (b, 0, 0)),
            scratch_shapes=[
                pltpu.VMEM((H + 2, W + 2, Cexp), jnp.float32),   # padded expanded activation
                pltpu.VMEM((HW, Cexp), jnp.float32),             # depthwise output (flat)
            ],
        ),
        compiler_params=pltpu.CompilerParams(
            dimension_semantics=("parallel",),
            vmem_limit_bytes=VMEM_LIMIT),
    )(x, blk['exp_w'], blk['exp_s'], blk['exp_b'],
      blk['dw_w'], blk['dw_s'], blk['dw_b'],
      blk['proj_w'], blk['proj_s'], blk['proj_b'])


def _head_kernel(x_ref, w_ref, s_ref, b_ref, o_ref, *, inv_hw):
    # pool first (linear, so identical to conv->BN->pool), then (B,C)x(C,N) matmul + BN
    pooled = jnp.sum(x_ref[...], axis=1) * inv_hw                   # (B, C)
    y = jnp.dot(pooled, w_ref[...], preferred_element_type=jnp.float32)
    o_ref[...] = y * s_ref[...] + b_ref[...]


def head_pool_conv_bn(x, w, scale, bias):
    # x: (B, HW, C) f32, w: (C, Npad) f32 -> (B, Npad) f32
    B, HW, C = x.shape
    N = w.shape[1]
    return pl.pallas_call(
        functools.partial(_head_kernel, inv_hw=1.0 / float(HW)),
        out_shape=jax.ShapeDtypeStruct((B, N), jnp.float32),
        in_specs=[_vmem()] * 4,
        out_specs=_vmem(),
        compiler_params=pltpu.CompilerParams(vmem_limit_bytes=VMEM_LIMIT),
    )(x, w, scale, bias)


# ----------------------------- JAX glue -----------------------------

def im2col_3x3(x, stride):
    # x: (B, H, W, C) NHWC, padding=1, kernel 3x3.
    # TODO(synk): move the stride-2 tap gather in-kernel (phase-split loads) to remove the
    # 9x patch materialization; acceptable here since the stem channel counts are tiny.
    B, H, W, C = x.shape
    xp = jnp.pad(x, ((0, 0), (1, 1), (1, 1), (0, 0)))
    Ho = (H + 2 - 3) // stride + 1
    Wo = (W + 2 - 3) // stride + 1
    cols = []
    for dy in range(3):
        for dx in range(3):
            cols.append(xp[:, dy:dy + stride * Ho:stride, dx:dx + stride * Wo:stride, :])
    patches = jnp.concatenate(cols, axis=-1)            # tap-major / channel-minor
    return patches.reshape(B * Ho * Wo, 9 * C), Ho, Wo


def conv3x3_bn_relu(x, w_flat, scale, bias, stride):
    # w_flat: (9*Cin, Cout_pad) bf16, already padded + flattened (tap-major / channel-minor)
    B, H, W, C = x.shape
    cout = w_flat.shape[-1]
    patches, Ho, Wo = im2col_3x3(x, stride)
    y = matmul_bn_act(patches.astype(jnp.bfloat16), w_flat, scale, bias, apply_relu=True)
    return y.reshape(B, Ho, Wo, cout)


def network_forward(x_nchw, params):
    x = jnp.transpose(x_nchw, (0, 2, 3, 1))             # NCHW -> NHWC (channels on lanes)
    # in_c: two Conv2dNormActivation(k=3, s=2, ReLU)
    x = conv3x3_bn_relu(x, *params['in_c0'], stride=2)
    x = conv3x3_bn_relu(x, *params['in_c1'], stride=2)
    B, H, W, C = x.shape
    x = x.reshape(B, H * W, C)                          # flat spatial for the block kernels
    for blk in params['blocks']:
        x = block_forward(x, blk, H, W)
    # feed_forward: 1x1 conv + BN + AdaptiveAvgPool2d((1,1)) + squeeze -> (B, n_classes)
    w_ff, s_ff, b_ff = params['ff']
    logits = head_pool_conv_bn(x, w_ff, s_ff, b_ff)     # (B, padded classes)
    return logits[:, :params['n_classes']]              # drop lane padding


# ----------------------------- deterministic parameter init -----------------------------

def conv_bn_folded(key, kh, kw, cin, cout):
    # Conv2d(bias=False) + BatchNorm2d folded to per-output-channel (scale, bias).
    # TODO(synk): BatchNorm implemented in inference mode (running stats), not batch stats.
    k1, k2, k3 = jax.random.split(key, 3)
    w = 0.1 * jax.random.normal(k1, (kh, kw, cin, cout), jnp.float32)     # HWIO
    gamma = 1.0 + 0.1 * jax.random.normal(k2, (cout,), jnp.float32)
    beta = 0.1 * jax.random.normal(k3, (cout,), jnp.float32)
    running_mean = jnp.zeros((cout,), jnp.float32)
    running_var = jnp.ones((cout,), jnp.float32)
    scale = gamma / jnp.sqrt(running_var + BN_EPS)
    bias = beta - running_mean * scale
    return w, scale, bias


def _padded_conv_bn(key, kh, kw, cin, cout, cin_pad, cout_pad):
    # Zero-pad Cin/Cout to lane-dense widths; padded lanes carry exact zeros through
    # BN (scale=0, bias=0), ReLU, residual adds and the head, so real channels match.
    w, s, b = conv_bn_folded(key, kh, kw, cin, cout)
    w = _pad_dim(_pad_dim(w, 2, cin_pad), 3, cout_pad)
    s = _pad_dim(s, 0, cout_pad).reshape(1, cout_pad)
    b = _pad_dim(b, 0, cout_pad).reshape(1, cout_pad)
    return w, s, b


def init_params(key, config):
    n_classes = config['n_classes']
    in_channels = config['in_channels']
    channels_multiplier = config['channels_multiplier']
    expansion_rate = config['expansion_rate']
    n_blocks = config['n_blocks']
    strides = config['strides']
    n_stages = len(n_blocks)

    base_channels = make_divisible(config['base_channels'], 8)
    channels_per_stage = [base_channels] + [
        make_divisible(base_channels * channels_multiplier ** s, 8) for s in range(n_stages)
    ]

    keys = iter(jax.random.split(key, 64))
    params = {'n_classes': n_classes}
    c0 = channels_per_stage[0]

    # in_c: two Conv2dNormActivation(k=3, s=2, ReLU); weights flattened (9*Cin, Cout_pad), bf16
    cout_p = _round_up(c0 // 4, LANE)
    w, s, b = _padded_conv_bn(next(keys), 3, 3, in_channels, c0 // 4, in_channels, cout_p)
    params['in_c0'] = (w.reshape(9 * in_channels, cout_p).astype(jnp.bfloat16), s, b)

    cin_p = cout_p
    cout_p = _round_up(c0, LANE)
    w, s, b = _padded_conv_bn(next(keys), 3, 3, c0 // 4, c0, cin_p, cout_p)
    params['in_c1'] = (w.reshape(9 * cin_p, cout_p).astype(jnp.bfloat16), s, b)

    blocks = []
    block_id = 0
    in_c = channels_per_stage[0]
    for stage_id in range(n_stages):
        out_c = channels_per_stage[stage_id + 1]
        for _ in range(n_blocks[stage_id]):
            block_id += 1
            stride = strides.get(f'b{block_id}', (1, 1))
            assert stride == (1, 1), "only stride (1,1) blocks are configured here"
            # TODO(synk): stride>1 depthwise (and the AvgPool shortcut it implies) not exercised.
            exp_c = make_divisible(in_c * expansion_rate, 8)
            in_p = _round_up(in_c, LANE)
            exp_p = _round_up(exp_c, LANE)
            out_p = _round_up(out_c, LANE)
            w_e, s_e, b_e = _padded_conv_bn(next(keys), 1, 1, in_c, exp_c, in_p, exp_p)
            w_d, s_d, b_d = _padded_conv_bn(next(keys), 3, 3, 1, exp_c, 1, exp_p)   # depthwise
            w_p, s_p, b_p = _padded_conv_bn(next(keys), 1, 1, exp_c, out_c, exp_p, out_p)
            blocks.append(dict(
                exp_w=w_e.reshape(in_p, exp_p).astype(jnp.bfloat16), exp_s=s_e, exp_b=b_e,
                dw_w=w_d.reshape(9, exp_p), dw_s=s_d, dw_b=b_d,
                proj_w=w_p.reshape(exp_p, out_p).astype(jnp.bfloat16), proj_s=s_p, proj_b=b_p,
                use_shortcut=(in_c == out_c),
            ))
            in_c = out_c
    params['blocks'] = blocks

    c_last = channels_per_stage[-1]
    c_last_p = _round_up(c_last, LANE)
    ncls_p = _round_up(n_classes, LANE)
    w_f, s_f, b_f = _padded_conv_bn(next(keys), 1, 1, c_last, n_classes, c_last_p, ncls_p)
    params['ff'] = (w_f.reshape(c_last_p, ncls_p), s_f, b_f)
    return params


# ----------------------------- demo -----------------------------

if __name__ == "__main__":
    config = dict(
        n_classes=10,
        in_channels=1,
        base_channels=16,
        channels_multiplier=2.0,
        expansion_rate=2.0,
        n_blocks=(1, 1),
        strides={},            # every block runs stride (1,1)
    )
    key = jax.random.PRNGKey(0)
    pkey, xkey = jax.random.split(key)
    params = init_params(pkey, config)

    x = jax.random.normal(xkey, (2, config['in_channels'], 16, 16), jnp.float32)  # NCHW
    logits = network_forward(x, params)
    logits = jax.block_until_ready(logits)
    assert logits.shape == (2, config['n_classes'])
    assert bool(jnp.all(jnp.isfinite(logits)))
    print("KERNEL_OK")
</pallas_src>

<mosaic_0001>
module attributes {stable_mosaic.version = 11 : i64} {
  func.func @_matmul_bn_act_kernel(%arg0: i32, %arg1: memref<128x9xbf16, #tpu.memory_space<vmem>>, %arg2: memref<9x128xbf16, #tpu.memory_space<vmem>>, %arg3: memref<1x128xf32, #tpu.memory_space<vmem>>, %arg4: memref<1x128xf32, #tpu.memory_space<vmem>>, %arg5: memref<128x128xf32, #tpu.memory_space<vmem>>) attributes {dimension_semantics = [#tpu.dimension_semantics<parallel>], iteration_bounds = array<i64: 1>, scalar_prefetch = 0 : i64, scratch_operands = 0 : i64, tpu.core_type = #tpu.core_type<tc>, window_params = [{transform_indices = @transform_0, window_bounds = array<i64: 128, 9>}, {pipeline_mode = #tpu.pipeline_mode<synchronous>, transform_indices = @transform_1, window_bounds = array<i64: 9, 128>}, {pipeline_mode = #tpu.pipeline_mode<synchronous>, transform_indices = @transform_2, window_bounds = array<i64: 1, 128>}, {pipeline_mode = #tpu.pipeline_mode<synchronous>, transform_indices = @transform_3, window_bounds = array<i64: 1, 128>}, {transform_indices = @transform_4, window_bounds = array<i64: 128, 128>}]} {
    %c0 = arith.constant 0 : index
    %c0_0 = arith.constant 0 : index
    %0 = vector.load %arg1[%c0, %c0_0] : memref<128x9xbf16, #tpu.memory_space<vmem>>, vector<128x9xbf16>
    %c0_1 = arith.constant 0 : index
    %c0_2 = arith.constant 0 : index
    %1 = vector.load %arg2[%c0_1, %c0_2] : memref<9x128xbf16, #tpu.memory_space<vmem>>, vector<9x128xbf16>
    %cst = arith.constant dense<0.000000e+00> : vector<128x128xf32>
    %2 = tpu.matmul %0, %1, %cst {dimension_numbers = #tpu.dot_dimension_numbers<[1], [0], [0], [1], [0, 0, 1, 1], [], []>} : vector<128x9xbf16>, vector<9x128xbf16>, vector<128x128xf32> -> vector<128x128xf32>
    %c0_3 = arith.constant 0 : index
    %c0_4 = arith.constant 0 : index
    %3 = vector.load %arg3[%c0_3, %c0_4] : memref<1x128xf32, #tpu.memory_space<vmem>>, vector<1x128xf32>
    %4 = vector.broadcast %3 : vector<1x128xf32> to vector<128x128xf32>
    %5 = arith.mulf %2, %4 : vector<128x128xf32>
    %c0_5 = arith.constant 0 : index
    %c0_6 = arith.constant 0 : index
    %6 = vector.load %arg4[%c0_5, %c0_6] : memref<1x128xf32, #tpu.memory_space<vmem>>, vector<1x128xf32>
    %7 = vector.broadcast %6 : vector<1x128xf32> to vector<128x128xf32>
    %8 = arith.addf %5, %7 : vector<128x128xf32>
    %cst_7 = arith.constant 0.000000e+00 : f32
    %9 = vector.broadcast %cst_7 : f32 to vector<128x128xf32>
    %10 = arith.maximumf %8, %9 : vector<128x128xf32>
    %c0_8 = arith.constant 0 : index
    %c0_9 = arith.constant 0 : index
    %11 = vector.load %arg5[%c0_8, %c0_9] : memref<128x128xf32, #tpu.memory_space<vmem>>, vector<128x128xf32>
    tpu.vector_store %arg5[%c0_8, %c0_9], %10 {strides = array<i32>} : memref<128x128xf32, #tpu.memory_space<vmem>>, vector<128x128xf32>,
    return
  }
  func.func @transform_0(%arg0: i32) -> (i32, i32) {
    %c0_i32 = arith.constant 0 : i32
    %c0_i32_0 = arith.constant 0 : i32
    return %arg0, %c0_i32 : i32, i32
  }
  func.func @transform_1(%arg0: i32) -> (i32, i32) {
    %c0_i32 = arith.constant 0 : i32
    %c0_i32_0 = arith.constant 0 : i32
    %c0_i32_1 = arith.constant 0 : i32
    return %c0_i32, %c0_i32_0 : i32, i32
  }
  func.func @transform_2(%arg0: i32) -> (i32, i32) {
    %c0_i32 = arith.constant 0 : i32
    %c0_i32_0 = arith.constant 0 : i32
    %c0_i32_1 = arith.constant 0 : i32
    return %c0_i32, %c0_i32_0 : i32, i32
  }
  func.func @transform_3(%arg0: i32) -> (i32, i32) {
    %c0_i32 = arith.constant 0 : i32
    %c0_i32_0 = arith.constant 0 : i32
    %c0_i32_1 = arith.constant 0 : i32
    return %c0_i32, %c0_i32_0 : i32, i32
  }
  func.func @transform_4(%arg0: i32) -> (i32, i32) {
    %c0_i32 = arith.constant 0 : i32
    %c0_i32_0 = arith.constant 0 : i32
    return %arg0, %c0_i32 : i32, i32
  }
}

</mosaic_0001>

<bundles_post_ra>
// kernel: tpu_custom_call.1
= control target key start
LH: loop header
LB: loop body
LE: loop exit
PB: predicated region body
PF: predicated region fallthrough
CT: control target
= control target key end

     0   :  { %vm107_vm0 = vcmask 1043456   ;;  %vm108_vm1 = vcmask 1044480   ;;  %v390_v2 = vmov 65535   ;;  %vm82_vm2 = vcmask 72704   ;;  %s490_s0 = inlined_call_operand.vmem [shape: bf16[128,9], index: 0, kind: input, shape index: {}]   ;;  %s491_s1 = inlined_call_operand.vmem [shape: bf16[9,128], index: 1, kind: input, shape index: {}]   ;;  %s492_s2 = inlined_call_operand.vmem [shape: f32[1,128], index: 2, kind: input, shape index: {}]   ;;  %s493_s3 = inlined_call_operand.vmem [shape: f32[1,128], index: 3, kind: input, shape index: {}]   ;;  %s494_s4 = inlined_call_operand.hbm [shape: f32[128,128], index: 4, kind: output, shape index: {}]  }
   0x1   :  { %v357_v0 = vld [vmem:[%s491_s1] sm:$0x1f]   ;;  %v109_v3 = vsel %vm107_vm0, 4294967295, %v390_v2  ;;  %v360_v7 = vld [vmem:[%s490_s0 + $0x8] sm:$0xff]   ;;  %v362_v9 = vld [vmem:[%s490_s0 + $0x10] sm:$0xff]  }
   0x2   :  { %v358_v1 = vld [vmem:[%s490_s0] sm:$0xff]   ;;  %v110_v4 = vsel %vm108_vm1, %v109_v3, 0  ;;  %v361_v8 = vld [vmem:[%s490_s0 + $0x28] sm:$0xff]   ;;  %v363_v10 = vld [vmem:[%s490_s0 + $0x30] sm:$0xff]  }
   0x3   :  { %335 = vmatprep.mubr.msk.bf16.mxu0 %vm82_vm2, %v358_v1  ;;  %v359_v5 = vld [vmem:[%s490_s0 + $0x20] sm:$0xff]   ;;  %v112_v6 = vand.u32 %v357_v0, %v110_v4 }
   0x4   :  { %343 = vmatprep.mubr.msk.bf16.mxu1 %vm82_vm2, %v359_v5 }
   0x5   :  { %333 = vmatprep.subr.bf16.mxu0 %v112_v6  ;;  %351 = vmatprep.subr.bf16.mxu1 %v112_v6 }
   0x6   :  { %334 = vmatpush3.bf16.msra.mxu0 %v112_v6  ;;  %352 = vmatpush3.bf16.msra.mxu1 %v112_v6 }
   0x7   :  { %9 = vsyncpa [#allocation3], 0  ;;  %v364_v11 = vld [vmem:[%s490_s0 + $0x18] sm:$0xff]   ;;  %v322_v13 = vld [vmem:[%s492_s2] ss:$0 sm:$0xff] }
   0x8   :  { %v365_v12 = vld [vmem:[%s490_s0 + $0x38] sm:$0xff]   ;;  %v460_v15 = vld [vmem:[%s493_s3] ss:$0 sm:$0xff]  ;;  %s391_s0 = smov [#allocation2]  }
   0x9   :  { %336 = vmatmul.mubr.msk.bf16.vlgmr.msra.gmra.mrb[0].mxu0 %vm82_vm2, %v360_v7  ;;  %344 = vmatmul.mubr.msk.bf16.vlgmr.msra.gmra.mrb[0].mxu1 %vm82_vm2, %v361_v8  ;;  %s294_s2 = sshll.u32 %s391_s0, 4  ;;  %s295_s2 = int_to_ptr.vmem [resolvable:$true] %s294_s2 }
   0xa   :  { %339 = vmatprep.mubr.msk.bf16.mxu0 %vm82_vm2, %v362_v9  ;;  %347 = vmatprep.mubr.msk.bf16.mxu1 %vm82_vm2, %v363_v10  ;;  %s366_s3 = scalar_lea.vmem %s295_s2, 2048  ;;  %p371_p1 = scmp.lt.s32.totalorder %s295_s2, %s295_s2 }
   0xb   :  { %p367_p0 = scmp.ne.s32.totalorder %s295_s2, %s366_s3  ;;  %p372_p2 = scmp.lt.s32.totalorder %s366_s3, %s366_s3 }
   0xd   :  { %p373_p3 = por %p372_p2, %p371_p1 }
   0xf   :  { %p374_p4 = pnand %p373_p3, %p367_p0 }
  0x11   :  { %340 = vmatmul.mubr.msk.bf16.gmra.mrb[4].mxu0 %vm82_vm2, %v364_v11  ;;  %348 = vmatmul.mubr.msk.bf16.gmra.mrb[4].mxu1 %vm82_vm2, %v365_v12 }
  0xdc   :  { %v337_v14 = vpop.f32.mrb[0].mxu0  ;;  %v345_v16 = vpop.f32.mrb[0].mxu1 }
  0xdd   :  { %v220_v17 = vmul.f32 %v337_v14, %v322_v13  ;;  %v228_v18 = vmul.f32 %v345_v16, %v322_v13  ;;  %v148_v19 = vpop.f32.mrb[1].mxu0  ;;  %v180_v20 = vpop.f32.mrb[1].mxu1 }
  0xde   :  { %v218_v21 = vmul.f32 %v322_v13, %v148_v19  ;;  %v226_v22 = vmul.f32 %v322_v13, %v180_v20  ;;  %v338_v23 = vpop.f32.mrb[2].mxu0  ;;  %v346_v24 = vpop.f32.mrb[2].mxu1 }
  0xdf   :  { %v243_v25 = vadd.f32 %v460_v15, %v220_v17  ;;  %v251_v26 = vadd.f32 %v460_v15, %v228_v18  ;;  %v221_v27 = vmul.f32 %v338_v23, %v322_v13  ;;  %v229_v28 = vmul.f32 %v346_v24, %v322_v13  ;;  %v151_v29 = vpop.f32.mrb[3].mxu0  ;;  %v183_v30 = vpop.f32.mrb[3].mxu1 }
  0xe0   :  { %v241_v31 = vadd.f32 %v460_v15, %v218_v21  ;;  %v249_v32 = vadd.f32 %v460_v15, %v226_v22  ;;  %v219_v33 = vmul.f32 %v322_v13, %v151_v29  ;;  %v227_v34 = vmul.f32 %v322_v13, %v183_v30 }
  0xe1   :  { %v259_v35 = vmax.f32 %v243_v25, 0.0  ;;  %v267_v36 = vmax.f32 %v251_v26, 0.0  ;;  %v244_v37 = vadd.f32 %v460_v15, %v221_v27  ;;  %v252_v38 = vadd.f32 %v460_v15, %v229_v28 }
  0xe2   :  { %v257_v39 = vmax.f32 %v241_v31, 0.0  ;;  %v265_v40 = vmax.f32 %v249_v32, 0.0  ;;  %v242_v41 = vadd.f32 %v460_v15, %v219_v33  ;;  %v250_v42 = vadd.f32 %v460_v15, %v227_v34 }
  0xe3   :  { %275 = vst [vmem:[#allocation2 + $0x10] sm:$0xff] %v259_v35  ;;  %283 = vst [vmem:[#allocation2 + $0x50] sm:$0xff] %v267_v36  ;;  %v260_v43 = vmax.f32 %v244_v37, 0.0  ;;  %v268_v44 = vmax.f32 %v252_v38, 0.0 }
  0xe4   :  { %273 = vst [vmem:[#allocation2] sm:$0xff] %v257_v39  ;;  %281 = vst [vmem:[#allocation2 + $0x40] sm:$0xff] %v265_v40  ;;  %v258_v45 = vmax.f32 %v242_v41, 0.0  ;;  %v266_v46 = vmax.f32 %v250_v42, 0.0  ;;  %v341_v47 = vpop.f32.mrb[4].mxu0  ;;  %v349_v48 = vpop.f32.mrb[4].mxu1 }
  0xe5   :  { %276 = vst [vmem:[#allocation2 + $0x18] sm:$0xff] %v260_v43  ;;  %284 = vst [vmem:[#allocation2 + $0x58] sm:$0xff] %v268_v44  ;;  %v224_v49 = vmul.f32 %v341_v47, %v322_v13  ;;  %v232_v50 = vmul.f32 %v349_v48, %v322_v13  ;;  %v164_v51 = vpop.f32.mrb[5].mxu0  ;;  %v196_v52 = vpop.f32.mrb[5].mxu1 }
  0xe6   :  { %274 = vst [vmem:[#allocation2 + $0x8] sm:$0xff] %v258_v45  ;;  %282 = vst [vmem:[#allocation2 + $0x48] sm:$0xff] %v266_v46  ;;  %v222_v53 = vmul.f32 %v322_v13, %v164_v51  ;;  %v230_v54 = vmul.f32 %v322_v13, %v196_v52  ;;  %v342_v55 = vpop.f32.mrb[6].mxu0  ;;  %v350_v56 = vpop.f32.mrb[6].mxu1 }
  0xe7   :  { %v247_v57 = vadd.f32 %v460_v15, %v224_v49  ;;  %v255_v58 = vadd.f32 %v460_v15, %v232_v50  ;;  %v225_v59 = vmul.f32 %v342_v55, %v322_v13  ;;  %v233_v60 = vmul.f32 %v350_v56, %v322_v13  ;;  %v167_v61 = vpop.f32.mrb[7].mxu0  ;;  %v199_v62 = vpop.f32.mrb[7].mxu1 }
  0xe8   :  { %v245_v63 = vadd.f32 %v460_v15, %v222_v53  ;;  %v253_v0 = vadd.f32 %v460_v15, %v230_v54  ;;  %v223_v1 = vmul.f32 %v322_v13, %v167_v61  ;;  %v231_v2 = vmul.f32 %v322_v13, %v199_v62 }
  0xe9   :  { %v263_v3 = vmax.f32 %v247_v57, 0.0  ;;  %v271_v4 = vmax.f32 %v255_v58, 0.0  ;;  %v248_v5 = vadd.f32 %v460_v15, %v225_v59  ;;  %v256_v6 = vadd.f32 %v460_v15, %v233_v60 }
  0xea   :  { %v261_v7 = vmax.f32 %v245_v63, 0.0  ;;  %v269_v8 = vmax.f32 %v253_v0, 0.0  ;;  %v246_v9 = vadd.f32 %v460_v15, %v223_v1  ;;  %v254_v10 = vadd.f32 %v460_v15, %v231_v2 }
  0xeb   :  { %279 = vst [vmem:[#allocation2 + $0x30] sm:$0xff] %v263_v3  ;;  %287 = vst [vmem:[#allocation2 + $0x70] sm:$0xff] %v271_v4  ;;  %v264_v11 = vmax.f32 %v248_v5, 0.0  ;;  %v272_v12 = vmax.f32 %v256_v6, 0.0 }
  0xec   :  { %277 = vst [vmem:[#allocation2 + $0x20] sm:$0xff] %v261_v7  ;;  %285 = vst [vmem:[#allocation2 + $0x60] sm:$0xff] %v269_v8  ;;  %v262_v13 = vmax.f32 %v246_v9, 0.0  ;;  %v270_v14 = vmax.f32 %v254_v10, 0.0 }
  0xed   :  { %280 = vst [vmem:[#allocation2 + $0x38] sm:$0xff] %v264_v11  ;;  %288 = vst [vmem:[#allocation2 + $0x78] sm:$0xff] %v272_v12 }
  0xee   :  { %278 = vst [vmem:[#allocation2 + $0x28] sm:$0xff] %v262_v13  ;;  %286 = vst [vmem:[#allocation2 + $0x68] sm:$0xff] %v270_v14 }
  0xef   :  { %377 = shalt.err (!%p374_p4)
}
  0xf0   :  { %s378_s12 = scalar_lea.hbm %s494_s4, 2048 }
  0xf1   :  { %p379_p5 = scmp.ne.s32.totalorder %s494_s4, %s378_s12  ;;  %p382_p6 = scmp.lt.u32.totalorder %s378_s12, %s494_s4 }
  0xf3   :  { %p384_p7 = pnand %p382_p6, %p379_p5 }
  0xf5   :  { %387 = shalt.err (!%p384_p7)
}
  0xf6   :  { %s392_s17 = smov 128   ;;  %s393_s18 = smov 8  }
  0xf7   :  { %300 = dma.vmem_to_hbm [thread:$0]  %s295_s2, 2048, %s494_s4, [#allocation3], %s392_s17, %s392_s17, %s393_s18  }
  0xf8   :  { %388 = dma.done.wait [#allocation3], 2048  }
  0xf9   :  { %389 = vsyncadd [#allocation3], 4294965248 }
  0xfa   :  { %304 = vsyncpa [#allocation3], 1 }

</bundles_post_ra>
